<compile_context>
chip_gen: v7x
topology: tpu7x:2x2x1
jax: 0.10.0
libtpu: 0.0.40
codegen_flags: <defaults>
</compile_context>

<pallas_src>
import functools

import jax
import jax.numpy as jnp
from jax.experimental import pallas as pl
from jax.experimental.pallas import tpu as pltpu


def _round_up(x, m):
    return ((x + m - 1) // m) * m


def _cdiv(a, b):
    return -(-a // b)


# ----------------------------------------------------------------------------
# Fused Pallas kernel: whole CVAE forward for one batch tile
# ----------------------------------------------------------------------------
def _cvae_fused_kernel(
    # batch-tiled inputs
    x_ref, y_ref, eps_ref,
    # encoder layer 1 (weight split: x-part, y-part) + bias
    e1wx_ref, e1wy_ref, e1b_ref,
    # encoder layer 2
    e2w_ref, e2b_ref,
    # merged (lane-padded) mu|logvar projection
    mlw_ref, mlb_ref,
    # decoder layer 1 (weight split: z-part, y-part) + bias
    d1wz_ref, d1wy_ref, d1b_ref,
    # decoder layer 2
    d2w_ref, d2b_ref,
    # decoder layer 3
    d3w_ref, d3b_ref,
    # outputs
    xr_ref, ml_ref,
    *, latent_dim, lat_pad,
):
    f32 = jnp.float32
    bf16 = jnp.bfloat16

    x = x_ref[...].astype(bf16)
    y = y_ref[...].astype(bf16)

    # --- encoder layer 1: split-weight matmul replaces concat([x, y], 1) ----
    h = jnp.dot(x, e1wx_ref[...], preferred_element_type=f32)
    h = h + jnp.dot(y, e1wy_ref[...], preferred_element_type=f32)
    h = jnp.maximum(h + e1b_ref[...], 0.0)

    # --- encoder layer 2 ----------------------------------------------------
    h = jnp.dot(h.astype(bf16), e2w_ref[...], preferred_element_type=f32)
    h = jnp.maximum(h + e2b_ref[...], 0.0)

    # --- merged, lane-padded mu|logvar projection + reparameterization ------
    ml = jnp.dot(h.astype(bf16), mlw_ref[...], preferred_element_type=f32)
    ml = ml + mlb_ref[...]
    mu = ml[:, :latent_dim]
    logvar = ml[:, lat_pad:lat_pad + latent_dim]   # lane-128-aligned slice
    z = mu + eps_ref[...] * jnp.exp(0.5 * logvar)  # exp -> EUP slot, f32

    # --- decoder layer 1: split-weight matmul replaces concat([z, y], 1) ----
    d = jnp.dot(z.astype(bf16), d1wz_ref[...], preferred_element_type=f32)
    d = d + jnp.dot(y, d1wy_ref[...], preferred_element_type=f32)
    d = jnp.maximum(d + d1b_ref[...], 0.0)

    # --- decoder layer 2 ----------------------------------------------------
    d = jnp.dot(d.astype(bf16), d2w_ref[...], preferred_element_type=f32)
    d = jnp.maximum(d + d2b_ref[...], 0.0)

    # --- decoder layer 3 + tanh ----------------------------------------------
    o = jnp.dot(d.astype(bf16), d3w_ref[...], preferred_element_type=f32)
    o = o + d3b_ref[...]

    xr_ref[...] = jnp.tanh(o).astype(xr_ref.dtype)
    ml_ref[...] = ml.astype(ml_ref.dtype)


# ----------------------------------------------------------------------------
# Batch-tile planning & per-generation tuning
# ----------------------------------------------------------------------------
def _device_tuning():
    """(target_tile, vmem_limit_bytes) chosen from the part's VMEM capacity."""
    try:
        vmem = pltpu.get_tpu_info().vmem_capacity_bytes
    except Exception:
        vmem = 64 * 1024 * 1024
    if vmem >= 96 * 1024 * 1024:          # v5e / v6e: 128 MiB VMEM per TC
        return 512, 96 * 1024 * 1024      # bigger tiles amortize step overhead
    return 256, 48 * 1024 * 1024          # v7x: 64 MiB VMEM -> keep headroom


def _plan_batch_tiling(batch, target_tile=256, min_tile=128):
    """Return (tile_rows, padded_batch).

    Small batches get one full-extent (sublane-padded) tile.  Large batches
    get ~target_tile-row tiles, never below min_tile, with an even tile count
    so v7x's two TensorCores stay balanced under dimension_semantics=parallel.
    """
    if batch < 2 * min_tile:
        tb = _round_up(batch, 8)
        return tb, tb
    n = max(_cdiv(batch, target_tile), 2)
    n += n % 2                             # even tile count
    tb = max(_round_up(_cdiv(batch, n), 8), min_tile)
    n = _cdiv(batch, tb)
    n += n % 2
    return tb, n * tb


# ----------------------------------------------------------------------------
# One-time weight re-layout (hoisted out of the per-forward path)
# ----------------------------------------------------------------------------
def prepare_cvae_params(params, input_dim, latent_dim, weight_dtype=jnp.bfloat16):
    """Split concat-facing weights, merge + lane-pad mu|logvar, cast weights
    to bf16 once (biases stay f32). Call once; reuse for every forward."""
    half_hidden = params["enc2_w"].shape[1]
    f32 = jnp.float32
    lat_pad = _round_up(latent_dim, 128)

    mlw = jnp.zeros((half_hidden, 2 * lat_pad), f32)
    mlw = mlw.at[:, :latent_dim].set(params["mu_w"])
    mlw = mlw.at[:, lat_pad:lat_pad + latent_dim].set(params["lv_w"])
    mlb = jnp.zeros((1, 2 * lat_pad), f32)
    mlb = mlb.at[0, :latent_dim].set(params["mu_b"])
    mlb = mlb.at[0, lat_pad:lat_pad + latent_dim].set(params["lv_b"])

    wd = weight_dtype
    return {
        "e1wx": params["enc1_w"][:input_dim, :].astype(wd),
        "e1wy": params["enc1_w"][input_dim:, :].astype(wd),
        "e1b":  params["enc1_b"].reshape(1, -1).astype(f32),
        "e2w":  params["enc2_w"].astype(wd),
        "e2b":  params["enc2_b"].reshape(1, -1).astype(f32),
        "mlw":  mlw.astype(wd),
        "mlb":  mlb,
        "d1wz": params["dec1_w"][:latent_dim, :].astype(wd),
        "d1wy": params["dec1_w"][latent_dim:, :].astype(wd),
        "d1b":  params["dec1_b"].reshape(1, -1).astype(f32),
        "d2w":  params["dec2_w"].astype(wd),
        "d2b":  params["dec2_b"].reshape(1, -1).astype(f32),
        "d3w":  params["dec3_w"].astype(wd),
        "d3b":  params["dec3_b"].reshape(1, -1).astype(f32),
    }


# ----------------------------------------------------------------------------
# Wrapper: batch-tiled pallas_call
# ----------------------------------------------------------------------------
def cvae_forward(prepped, x, y, eps, *, target_tile=None, vmem_limit_bytes=None):
    """Mirrors CVAE.forward(x, y); eps is the randn_like noise made explicit."""
    batch, input_dim = x.shape
    label_dim = y.shape[1]
    latent_dim = eps.shape[1]
    lat_pad = prepped["mlw"].shape[1] // 2
    dtype = x.dtype

    dflt_tile, dflt_vmem = _device_tuning()
    if target_tile is None:
        target_tile = dflt_tile
    if vmem_limit_bytes is None:
        vmem_limit_bytes = dflt_vmem

    tb, padded = _plan_batch_tiling(batch, target_tile)
    if padded != batch:
        pad = padded - batch
        x = jnp.pad(x, ((0, pad), (0, 0)))
        y = jnp.pad(y, ((0, pad), (0, 0)))
        eps = jnp.pad(eps, ((0, pad), (0, 0)))
    grid = (padded // tb,)

    def row_spec(cols):  # batch-tiled operand
        return pl.BlockSpec((tb, cols), lambda i: (i, 0))

    operands = (
        x, y, eps,
        prepped["e1wx"], prepped["e1wy"], prepped["e1b"],
        prepped["e2w"], prepped["e2b"],
        prepped["mlw"], prepped["mlb"],
        prepped["d1wz"], prepped["d1wy"], prepped["d1b"],
        prepped["d2w"], prepped["d2b"],
        prepped["d3w"], prepped["d3b"],
    )
    # weights/biases: constant index_map -> VMEM-resident across batch tiles
    in_specs = [row_spec(input_dim), row_spec(label_dim), row_spec(latent_dim)] + [
        pl.BlockSpec(op.shape, lambda i: (0, 0)) for op in operands[3:]
    ]

    kernel = functools.partial(
        _cvae_fused_kernel, latent_dim=latent_dim, lat_pad=lat_pad)

    x_recon, ml = pl.pallas_call(
        kernel,
        grid=grid,
        in_specs=in_specs,
        out_specs=(row_spec(input_dim), row_spec(2 * lat_pad)),
        out_shape=(
            jax.ShapeDtypeStruct((padded, input_dim), dtype),
            jax.ShapeDtypeStruct((padded, 2 * lat_pad), jnp.float32),
        ),
        compiler_params=pltpu.CompilerParams(
            dimension_semantics=("parallel",),     # batch tiles -> both TCs on v7x
            vmem_limit_bytes=vmem_limit_bytes,
        ),
    )(*operands)

    mu = ml[:batch, :latent_dim]
    logvar = ml[:batch, lat_pad:lat_pad + latent_dim]
    return x_recon[:batch], mu, logvar


# ----------------------------------------------------------------------------
# Parameters (PyTorch nn.Linear layout, weights stored as (in, out))
# ----------------------------------------------------------------------------
def init_cvae_params(key, input_dim, label_dim, hidden_dim, latent_dim,
                     dtype=jnp.float32):
    """PyTorch-Linear-style init: U(-1/sqrt(fan_in), 1/sqrt(fan_in))."""
    dims = {
        "enc1": (input_dim + label_dim, hidden_dim),
        "enc2": (hidden_dim, hidden_dim // 2),
        "mu":   (hidden_dim // 2, latent_dim),
        "lv":   (hidden_dim // 2, latent_dim),
        "dec1": (latent_dim + label_dim, hidden_dim // 2),
        "dec2": (hidden_dim // 2, hidden_dim),
        "dec3": (hidden_dim, input_dim),
    }
    params = {}
    for name, (fan_in, fan_out) in dims.items():
        key, kw, kb = jax.random.split(key, 3)
        bound = 1.0 / (fan_in ** 0.5)
        params[name + "_w"] = jax.random.uniform(
            kw, (fan_in, fan_out), dtype, minval=-bound, maxval=bound)
        params[name + "_b"] = jax.random.uniform(
            kb, (fan_out,), dtype, minval=-bound, maxval=bound)
    return params


# ----------------------------------------------------------------------------
# Pure-JAX reference (matches the PyTorch forward, f32 throughout)
# ----------------------------------------------------------------------------
def cvae_forward_ref(params, x, y, eps):
    x_cond = jnp.concatenate([x, y], axis=1)
    h = jax.nn.relu(x_cond @ params["enc1_w"] + params["enc1_b"])
    h = jax.nn.relu(h @ params["enc2_w"] + params["enc2_b"])
    mu = h @ params["mu_w"] + params["mu_b"]
    logvar = h @ params["lv_w"] + params["lv_b"]
    z = mu + eps * jnp.exp(0.5 * logvar)
    z_cond = jnp.concatenate([z, y], axis=1)
    d = jax.nn.relu(z_cond @ params["dec1_w"] + params["dec1_b"])
    d = jax.nn.relu(d @ params["dec2_w"] + params["dec2_b"])
    x_recon = jnp.tanh(d @ params["dec3_w"] + params["dec3_b"])
    return x_recon, mu, logvar


# ----------------------------------------------------------------------------
if __name__ == "__main__":
    # Small shapes consistent with the module structure
    # (real defaults: input_dim=label_dim=864, hidden_dim=400, latent_dim=20).
    batch = 8
    input_dim = 96
    label_dim = 96
    hidden_dim = 64
    latent_dim = 16

    key = jax.random.PRNGKey(0)
    kp, kx, ky, keps = jax.random.split(key, 4)

    params = init_cvae_params(kp, input_dim, label_dim, hidden_dim, latent_dim)
    x = jax.random.normal(kx, (batch, input_dim), jnp.float32)
    y = jax.random.normal(ky, (batch, label_dim), jnp.float32)
    # eps = torch.randn_like(std): explicit noise input so the kernel is deterministic.
    eps = jax.random.normal(keps, (batch, latent_dim), jnp.float32)

    # One-time weight re-layout + bf16 cast, hoisted out of the forward path.
    prepped = jax.tree_util.tree_map(jnp.asarray,
                                     prepare_cvae_params(params, input_dim, latent_dim))

    fwd = jax.jit(cvae_forward)
    x_recon, mu, logvar = fwd(prepped, x, y, eps)
    jax.block_until_ready((x_recon, mu, logvar))

    # correctness check against the pure-JAX f32 reference
    # (tolerance loosened for bf16 MXU matmuls with f32 accumulation)
    r_recon, r_mu, r_lv = cvae_forward_ref(params, x, y, eps)
    assert x_recon.shape == (batch, input_dim)
    assert mu.shape == (batch, latent_dim)
    assert logvar.shape == (batch, latent_dim)
    assert jnp.allclose(x_recon, r_recon, atol=2e-2, rtol=2e-2)
    assert jnp.allclose(mu, r_mu, atol=2e-2, rtol=2e-2)
    assert jnp.allclose(logvar, r_lv, atol=2e-2, rtol=2e-2)

    print("KERNEL_OK")
</pallas_src>

<mosaic_0001>
module attributes {stable_mosaic.version = 11 : i64} {
  func.func @_cvae_fused_kernel(%arg0: i32, %arg1: memref<8x96xf32, #tpu.memory_space<vmem>>, %arg2: memref<8x96xf32, #tpu.memory_space<vmem>>, %arg3: memref<8x16xf32, #tpu.memory_space<vmem>>, %arg4: memref<96x64xbf16, #tpu.memory_space<vmem>>, %arg5: memref<96x64xbf16, #tpu.memory_space<vmem>>, %arg6: memref<1x64xf32, #tpu.memory_space<vmem>>, %arg7: memref<64x32xbf16, #tpu.memory_space<vmem>>, %arg8: memref<1x32xf32, #tpu.memory_space<vmem>>, %arg9: memref<32x256xbf16, #tpu.memory_space<vmem>>, %arg10: memref<1x256xf32, #tpu.memory_space<vmem>>, %arg11: memref<16x32xbf16, #tpu.memory_space<vmem>>, %arg12: memref<96x32xbf16, #tpu.memory_space<vmem>>, %arg13: memref<1x32xf32, #tpu.memory_space<vmem>>, %arg14: memref<32x64xbf16, #tpu.memory_space<vmem>>, %arg15: memref<1x64xf32, #tpu.memory_space<vmem>>, %arg16: memref<64x96xbf16, #tpu.memory_space<vmem>>, %arg17: memref<1x96xf32, #tpu.memory_space<vmem>>, %arg18: memref<8x96xf32, #tpu.memory_space<vmem>>, %arg19: memref<8x256xf32, #tpu.memory_space<vmem>>) attributes {dimension_semantics = [#tpu.dimension_semantics<parallel>], iteration_bounds = array<i64: 1>, scalar_prefetch = 0 : i64, scratch_operands = 0 : i64, tpu.core_type = #tpu.core_type<tc>, window_params = [{transform_indices = @transform_0, window_bounds = array<i64: 8, 96>}, {transform_indices = @transform_1, window_bounds = array<i64: 8, 96>}, {transform_indices = @transform_2, window_bounds = array<i64: 8, 16>}, {pipeline_mode = #tpu.pipeline_mode<synchronous>, transform_indices = @transform_3, window_bounds = array<i64: 96, 64>}, {pipeline_mode = #tpu.pipeline_mode<synchronous>, transform_indices = @transform_4, window_bounds = array<i64: 96, 64>}, {pipeline_mode = #tpu.pipeline_mode<synchronous>, transform_indices = @transform_5, window_bounds = array<i64: 1, 64>}, {pipeline_mode = #tpu.pipeline_mode<synchronous>, transform_indices = @transform_6, window_bounds = array<i64: 64, 32>}, {pipeline_mode = #tpu.pipeline_mode<synchronous>, transform_indices = @transform_7, window_bounds = array<i64: 1, 32>}, {pipeline_mode = #tpu.pipeline_mode<synchronous>, transform_indices = @transform_8, window_bounds = array<i64: 32, 256>}, {pipeline_mode = #tpu.pipeline_mode<synchronous>, transform_indices = @transform_9, window_bounds = array<i64: 1, 256>}, {pipeline_mode = #tpu.pipeline_mode<synchronous>, transform_indices = @transform_10, window_bounds = array<i64: 16, 32>}, {pipeline_mode = #tpu.pipeline_mode<synchronous>, transform_indices = @transform_11, window_bounds = array<i64: 96, 32>}, {pipeline_mode = #tpu.pipeline_mode<synchronous>, transform_indices = @transform_12, window_bounds = array<i64: 1, 32>}, {pipeline_mode = #tpu.pipeline_mode<synchronous>, transform_indices = @transform_13, window_bounds = array<i64: 32, 64>}, {pipeline_mode = #tpu.pipeline_mode<synchronous>, transform_indices = @transform_14, window_bounds = array<i64: 1, 64>}, {pipeline_mode = #tpu.pipeline_mode<synchronous>, transform_indices = @transform_15, window_bounds = array<i64: 64, 96>}, {pipeline_mode = #tpu.pipeline_mode<synchronous>, transform_indices = @transform_16, window_bounds = array<i64: 1, 96>}, {transform_indices = @transform_17, window_bounds = array<i64: 8, 96>}, {transform_indices = @transform_18, window_bounds = array<i64: 8, 256>}]} {
    %c0 = arith.constant 0 : index
    %c0_0 = arith.constant 0 : index
    %0 = vector.load %arg1[%c0, %c0_0] : memref<8x96xf32, #tpu.memory_space<vmem>>, vector<8x96xf32>
    %1 = arith.truncf %0 : vector<8x96xf32> to vector<8x96xbf16>
    %c0_1 = arith.constant 0 : index
    %c0_2 = arith.constant 0 : index
    %2 = vector.load %arg2[%c0_1, %c0_2] : memref<8x96xf32, #tpu.memory_space<vmem>>, vector<8x96xf32>
    %3 = arith.truncf %2 : vector<8x96xf32> to vector<8x96xbf16>
    %c0_3 = arith.constant 0 : index
    %c0_4 = arith.constant 0 : index
    %4 = vector.load %arg4[%c0_3, %c0_4] : memref<96x64xbf16, #tpu.memory_space<vmem>>, vector<96x64xbf16>
    %cst = arith.constant dense<0.000000e+00> : vector<8x64xf32>
    %5 = tpu.matmul %1, %4, %cst {dimension_numbers = #tpu.dot_dimension_numbers<[1], [0], [0], [1], [0, 0, 1, 1], [], []>} : vector<8x96xbf16>, vector<96x64xbf16>, vector<8x64xf32> -> vector<8x64xf32>
    %c0_5 = arith.constant 0 : index
    %c0_6 = arith.constant 0 : index
    %6 = vector.load %arg5[%c0_5, %c0_6] : memref<96x64xbf16, #tpu.memory_space<vmem>>, vector<96x64xbf16>
    %cst_7 = arith.constant dense<0.000000e+00> : vector<8x64xf32>
    %7 = tpu.matmul %3, %6, %cst_7 {dimension_numbers = #tpu.dot_dimension_numbers<[1], [0], [0], [1], [0, 0, 1, 1], [], []>} : vector<8x96xbf16>, vector<96x64xbf16>, vector<8x64xf32> -> vector<8x64xf32>
    %8 = arith.addf %5, %7 : vector<8x64xf32>
    %c0_8 = arith.constant 0 : index
    %c0_9 = arith.constant 0 : index
    %9 = vector.load %arg6[%c0_8, %c0_9] : memref<1x64xf32, #tpu.memory_space<vmem>>, vector<1x64xf32>
    %10 = vector.broadcast %9 : vector<1x64xf32> to vector<8x64xf32>
    %11 = arith.addf %8, %10 : vector<8x64xf32>
    %cst_10 = arith.constant 0.000000e+00 : f32
    %12 = vector.broadcast %cst_10 : f32 to vector<8x64xf32>
    %13 = arith.maximumf %11, %12 : vector<8x64xf32>
    %14 = arith.truncf %13 : vector<8x64xf32> to vector<8x64xbf16>
    %c0_11 = arith.constant 0 : index
    %c0_12 = arith.constant 0 : index
    %15 = vector.load %arg7[%c0_11, %c0_12] : memref<64x32xbf16, #tpu.memory_space<vmem>>, vector<64x32xbf16>
    %cst_13 = arith.constant dense<0.000000e+00> : vector<8x32xf32>
    %16 = tpu.matmul %14, %15, %cst_13 {dimension_numbers = #tpu.dot_dimension_numbers<[1], [0], [0], [1], [0, 0, 1, 1], [], []>} : vector<8x64xbf16>, vector<64x32xbf16>, vector<8x32xf32> -> vector<8x32xf32>
    %c0_14 = arith.constant 0 : index
    %c0_15 = arith.constant 0 : index
    %17 = vector.load %arg8[%c0_14, %c0_15] : memref<1x32xf32, #tpu.memory_space<vmem>>, vector<1x32xf32>
    %18 = vector.broadcast %17 : vector<1x32xf32> to vector<8x32xf32>
    %19 = arith.addf %16, %18 : vector<8x32xf32>
    %cst_16 = arith.constant 0.000000e+00 : f32
    %20 = vector.broadcast %cst_16 : f32 to vector<8x32xf32>
    %21 = arith.maximumf %19, %20 : vector<8x32xf32>
    %22 = arith.truncf %21 : vector<8x32xf32> to vector<8x32xbf16>
    %c0_17 = arith.constant 0 : index
    %c0_18 = arith.constant 0 : index
    %23 = vector.load %arg9[%c0_17, %c0_18] : memref<32x256xbf16, #tpu.memory_space<vmem>>, vector<32x256xbf16>
    %cst_19 = arith.constant dense<0.000000e+00> : vector<8x256xf32>
    %24 = tpu.matmul %22, %23, %cst_19 {dimension_numbers = #tpu.dot_dimension_numbers<[1], [0], [0], [1], [0, 0, 1, 1], [], []>} : vector<8x32xbf16>, vector<32x256xbf16>, vector<8x256xf32> -> vector<8x256xf32>
    %c0_20 = arith.constant 0 : index
    %c0_21 = arith.constant 0 : index
    %25 = vector.load %arg10[%c0_20, %c0_21] : memref<1x256xf32, #tpu.memory_space<vmem>>, vector<1x256xf32>
    %26 = vector.broadcast %25 : vector<1x256xf32> to vector<8x256xf32>
    %27 = arith.addf %24, %26 : vector<8x256xf32>
    %28 = vector.extract_strided_slice %27 {offsets = [0, 0], sizes = [8, 16], strides = [1, 1]} : vector<8x256xf32> to vector<8x16xf32>
    %29 = vector.extract_strided_slice %27 {offsets = [0, 128], sizes = [8, 16], strides = [1, 1]} : vector<8x256xf32> to vector<8x16xf32>
    %c0_22 = arith.constant 0 : index
    %c0_23 = arith.constant 0 : index
    %30 = vector.load %arg3[%c0_22, %c0_23] : memref<8x16xf32, #tpu.memory_space<vmem>>, vector<8x16xf32>
    %cst_24 = arith.constant 5.000000e-01 : f32
    %31 = vector.broadcast %cst_24 : f32 to vector<8x16xf32>
    %32 = arith.mulf %31, %29 : vector<8x16xf32>
    %33 = math.exp %32 : vector<8x16xf32>
    %34 = arith.mulf %30, %33 : vector<8x16xf32>
    %35 = arith.addf %28, %34 : vector<8x16xf32>
    %36 = arith.truncf %35 : vector<8x16xf32> to vector<8x16xbf16>
    %c0_25 = arith.constant 0 : index
    %c0_26 = arith.constant 0 : index
    %37 = vector.load %arg11[%c0_25, %c0_26] : memref<16x32xbf16, #tpu.memory_space<vmem>>, vector<16x32xbf16>
    %cst_27 = arith.constant dense<0.000000e+00> : vector<8x32xf32>
    %38 = tpu.matmul %36, %37, %cst_27 {dimension_numbers = #tpu.dot_dimension_numbers<[1], [0], [0], [1], [0, 0, 1, 1], [], []>} : vector<8x16xbf16>, vector<16x32xbf16>, vector<8x32xf32> -> vector<8x32xf32>
    %c0_28 = arith.constant 0 : index
    %c0_29 = arith.constant 0 : index
    %39 = vector.load %arg12[%c0_28, %c0_29] : memref<96x32xbf16, #tpu.memory_space<vmem>>, vector<96x32xbf16>
    %cst_30 = arith.constant dense<0.000000e+00> : vector<8x32xf32>
    %40 = tpu.matmul %3, %39, %cst_30 {dimension_numbers = #tpu.dot_dimension_numbers<[1], [0], [0], [1], [0, 0, 1, 1], [], []>} : vector<8x96xbf16>, vector<96x32xbf16>, vector<8x32xf32> -> vector<8x32xf32>
    %41 = arith.addf %38, %40 : vector<8x32xf32>
    %c0_31 = arith.constant 0 : index
    %c0_32 = arith.constant 0 : index
    %42 = vector.load %arg13[%c0_31, %c0_32] : memref<1x32xf32, #tpu.memory_space<vmem>>, vector<1x32xf32>
    %43 = vector.broadcast %42 : vector<1x32xf32> to vector<8x32xf32>
    %44 = arith.addf %41, %43 : vector<8x32xf32>
    %cst_33 = arith.constant 0.000000e+00 : f32
    %45 = vector.broadcast %cst_33 : f32 to vector<8x32xf32>
    %46 = arith.maximumf %44, %45 : vector<8x32xf32>
    %47 = arith.truncf %46 : vector<8x32xf32> to vector<8x32xbf16>
    %c0_34 = arith.constant 0 : index
    %c0_35 = arith.constant 0 : index
    %48 = vector.load %arg14[%c0_34, %c0_35] : memref<32x64xbf16, #tpu.memory_space<vmem>>, vector<32x64xbf16>
    %cst_36 = arith.constant dense<0.000000e+00> : vector<8x64xf32>
    %49 = tpu.matmul %47, %48, %cst_36 {dimension_numbers = #tpu.dot_dimension_numbers<[1], [0], [0], [1], [0, 0, 1, 1], [], []>} : vector<8x32xbf16>, vector<32x64xbf16>, vector<8x64xf32> -> vector<8x64xf32>
    %c0_37 = arith.constant 0 : index
    %c0_38 = arith.constant 0 : index
    %50 = vector.load %arg15[%c0_37, %c0_38] : memref<1x64xf32, #tpu.memory_space<vmem>>, vector<1x64xf32>
    %51 = vector.broadcast %50 : vector<1x64xf32> to vector<8x64xf32>
    %52 = arith.addf %49, %51 : vector<8x64xf32>
    %cst_39 = arith.constant 0.000000e+00 : f32
    %53 = vector.broadcast %cst_39 : f32 to vector<8x64xf32>
    %54 = arith.maximumf %52, %53 : vector<8x64xf32>
    %55 = arith.truncf %54 : vector<8x64xf32> to vector<8x64xbf16>
    %c0_40 = arith.constant 0 : index
    %c0_41 = arith.constant 0 : index
    %56 = vector.load %arg16[%c0_40, %c0_41] : memref<64x96xbf16, #tpu.memory_space<vmem>>, vector<64x96xbf16>
    %cst_42 = arith.constant dense<0.000000e+00> : vector<8x96xf32>
    %57 = tpu.matmul %55, %56, %cst_42 {dimension_numbers = #tpu.dot_dimension_numbers<[1], [0], [0], [1], [0, 0, 1, 1], [], []>} : vector<8x64xbf16>, vector<64x96xbf16>, vector<8x96xf32> -> vector<8x96xf32>
    %c0_43 = arith.constant 0 : index
    %c0_44 = arith.constant 0 : index
    %58 = vector.load %arg17[%c0_43, %c0_44] : memref<1x96xf32, #tpu.memory_space<vmem>>, vector<1x96xf32>
    %59 = vector.broadcast %58 : vector<1x96xf32> to vector<8x96xf32>
    %60 = arith.addf %57, %59 : vector<8x96xf32>
    %61 = math.tanh %60 : vector<8x96xf32>
    %c0_45 = arith.constant 0 : index
    %c0_46 = arith.constant 0 : index
    %62 = vector.load %arg18[%c0_45, %c0_46] : memref<8x96xf32, #tpu.memory_space<vmem>>, vector<8x96xf32>
    tpu.vector_store %arg18[%c0_45, %c0_46], %61 {strides = array<i32>} : memref<8x96xf32, #tpu.memory_space<vmem>>, vector<8x96xf32>,
    %c0_47 = arith.constant 0 : index
    %c0_48 = arith.constant 0 : index
    %63 = vector.load %arg19[%c0_47, %c0_48] : memref<8x256xf32, #tpu.memory_space<vmem>>, vector<8x256xf32>
    tpu.vector_store %arg19[%c0_47, %c0_48], %27 {strides = array<i32>} : memref<8x256xf32, #tpu.memory_space<vmem>>, vector<8x256xf32>,
    return
  }
  func.func @transform_0(%arg0: i32) -> (i32, i32) {
    %c0_i32 = arith.constant 0 : i32
    %c0_i32_0 = arith.constant 0 : i32
    return %arg0, %c0_i32 : i32, i32
  }
  func.func @transform_1(%arg0: i32) -> (i32, i32) {
    %c0_i32 = arith.constant 0 : i32
    %c0_i32_0 = arith.constant 0 : i32
    return %arg0, %c0_i32 : i32, i32
  }
  func.func @transform_2(%arg0: i32) -> (i32, i32) {
    %c0_i32 = arith.constant 0 : i32
    %c0_i32_0 = arith.constant 0 : i32
    return %arg0, %c0_i32 : i32, i32
  }
  func.func @transform_3(%arg0: i32) -> (i32, i32) {
    %c0_i32 = arith.constant 0 : i32
    %c0_i32_0 = arith.constant 0 : i32
    %c0_i32_1 = arith.constant 0 : i32
    return %c0_i32, %c0_i32_0 : i32, i32
  }
  func.func @transform_4(%arg0: i32) -> (i32, i32) {
    %c0_i32 = arith.constant 0 : i32
    %c0_i32_0 = arith.constant 0 : i32
    %c0_i32_1 = arith.constant 0 : i32
    return %c0_i32, %c0_i32_0 : i32, i32
  }
  func.func @transform_5(%arg0: i32) -> (i32, i32) {
    %c0_i32 = arith.constant 0 : i32
    %c0_i32_0 = arith.constant 0 : i32
    %c0_i32_1 = arith.constant 0 : i32
    return %c0_i32, %c0_i32_0 : i32, i32
  }
  func.func @transform_6(%arg0: i32) -> (i32, i32) {
    %c0_i32 = arith.constant 0 : i32
    %c0_i32_0 = arith.constant 0 : i32
    %c0_i32_1 = arith.constant 0 : i32
    return %c0_i32, %c0_i32_0 : i32, i32
  }
  func.func @transform_7(%arg0: i32) -> (i32, i32) {
    %c0_i32 = arith.constant 0 : i32
    %c0_i32_0 = arith.constant 0 : i32
    %c0_i32_1 = arith.constant 0 : i32
    return %c0_i32, %c0_i32_0 : i32, i32
  }
  func.func @transform_8(%arg0: i32) -> (i32, i32) {
    %c0_i32 = arith.constant 0 : i32
    %c0_i32_0 = arith.constant 0 : i32
    %c0_i32_1 = arith.constant 0 : i32
    return %c0_i32, %c0_i32_0 : i32, i32
  }
  func.func @transform_9(%arg0: i32) -> (i32, i32) {
    %c0_i32 = arith.constant 0 : i32
    %c0_i32_0 = arith.constant 0 : i32
    %c0_i32_1 = arith.constant 0 : i32
    return %c0_i32, %c0_i32_0 : i32, i32
  }
  func.func @transform_10(%arg0: i32) -> (i32, i32) {
    %c0_i32 = arith.constant 0 : i32
    %c0_i32_0 = arith.constant 0 : i32
    %c0_i32_1 = arith.constant 0 : i32
    return %c0_i32, %c0_i32_0 : i32, i32
  }
  func.func @transform_11(%arg0: i32) -> (i32, i32) {
    %c0_i32 = arith.constant 0 : i32
    %c0_i32_0 = arith.constant 0 : i32
    %c0_i32_1 = arith.constant 0 : i32
    return %c0_i32, %c0_i32_0 : i32, i32
  }
  func.func @transform_12(%arg0: i32) -> (i32, i32) {
    %c0_i32 = arith.constant 0 : i32
    %c0_i32_0 = arith.constant 0 : i32
    %c0_i32_1 = arith.constant 0 : i32
    return %c0_i32, %c0_i32_0 : i32, i32
  }
  func.func @transform_13(%arg0: i32) -> (i32, i32) {
    %c0_i32 = arith.constant 0 : i32
    %c0_i32_0 = arith.constant 0 : i32
    %c0_i32_1 = arith.constant 0 : i32
    return %c0_i32, %c0_i32_0 : i32, i32
  }
  func.func @transform_14(%arg0: i32) -> (i32, i32) {
    %c0_i32 = arith.constant 0 : i32
    %c0_i32_0 = arith.constant 0 : i32
    %c0_i32_1 = arith.constant 0 : i32
    return %c0_i32, %c0_i32_0 : i32, i32
  }
  func.func @transform_15(%arg0: i32) -> (i32, i32) {
    %c0_i32 = arith.constant 0 : i32
    %c0_i32_0 = arith.constant 0 : i32
    %c0_i32_1 = arith.constant 0 : i32
    return %c0_i32, %c0_i32_0 : i32, i32
  }
  func.func @transform_16(%arg0: i32) -> (i32, i32) {
    %c0_i32 = arith.constant 0 : i32
    %c0_i32_0 = arith.constant 0 : i32
    %c0_i32_1 = arith.constant 0 : i32
    return %c0_i32, %c0_i32_0 : i32, i32
  }
  func.func @transform_17(%arg0: i32) -> (i32, i32) {
    %c0_i32 = arith.constant 0 : i32
    %c0_i32_0 = arith.constant 0 : i32
    return %arg0, %c0_i32 : i32, i32
  }
  func.func @transform_18(%arg0: i32) -> (i32, i32) {
    %c0_i32 = arith.constant 0 : i32
    %c0_i32_0 = arith.constant 0 : i32
    return %arg0, %c0_i32 : i32, i32
  }
}

</mosaic_0001>

<bundles_post_ra>
// kernel: cvae_forward.1
= control target key start
LH: loop header
LB: loop body
LE: loop exit
PB: predicated region body
PF: predicated region fallthrough
CT: control target
= control target key end

     0   :  { %s1285_s0 = inlined_call_operand.vmem [shape: f32[8,96], index: 0, kind: input, shape index: {}]   ;;  %s1286_s1 = inlined_call_operand.vmem [shape: f32[8,96], index: 1, kind: input, shape index: {}]   ;;  %s1287_s2 = inlined_call_operand.vmem [shape: f32[8,16], index: 2, kind: input, shape index: {}]   ;;  %s1288_s3 = inlined_call_operand.vmem [shape: bf16[96,64], index: 3, kind: input, shape index: {}]   ;;  %s1289_s4 = inlined_call_operand.vmem [shape: bf16[96,64], index: 4, kind: input, shape index: {}]   ;;  %s1290_s5 = inlined_call_operand.vmem [shape: f32[1,64], index: 5, kind: input, shape index: {}]   ;;  %s1291_s6 = inlined_call_operand.vmem [shape: bf16[64,32], index: 6, kind: input, shape index: {}]   ;;  %s1292_s7 = inlined_call_operand.vmem [shape: f32[1,32], index: 7, kind: input, shape index: {}]   ;;  %s1293_s8 = inlined_call_operand.vmem [shape: bf16[32,256], index: 8, kind: input, shape index: {}]   ;;  %s1294_s9 = inlined_call_operand.vmem [shape: f32[1,256], index: 9, kind: input, shape index: {}]   ;;  %s1295_s10 = inlined_call_operand.vmem [shape: bf16[16,32], index: 10, kind: input, shape index: {}]   ;;  %s1296_s11 = inlined_call_operand.vmem [shape: bf16[96,32], index: 11, kind: input, shape index: {}]   ;;  %s1297_s12 = inlined_call_operand.vmem [shape: f32[1,32], index: 12, kind: input, shape index: {}]   ;;  %s1298_s13 = inlined_call_operand.vmem [shape: bf16[32,64], index: 13, kind: input, shape index: {}]   ;;  %s1299_s14 = inlined_call_operand.vmem [shape: f32[1,64], index: 14, kind: input, shape index: {}]   ;;  %s1300_s15 = inlined_call_operand.vmem [shape: bf16[64,96], index: 15, kind: input, shape index: {}]   ;;  %s1301_s16 = inlined_call_operand.vmem [shape: f32[1,96], index: 16, kind: input, shape index: {}]   ;;  %s1302_s17 = inlined_call_operand.hbm [shape: f32[8,96], index: 17, kind: output, shape index: {0}]   ;;  %s1303_s18 = inlined_call_operand.vmem [shape: f32[8,256], index: 18, kind: output, shape index: {1}]  }
   0x1   :  { %1304 = sst [smem:[#allocation5_spill]] %s1285_s0 }
   0x2   :  { %1305 = sst [smem:[#allocation6_spill]] %s1286_s1 }
   0x3   :  { %1306 = sst [smem:[#allocation7_spill]] %s1287_s2 }
   0x4   :  { %v924_v0 = vld [vmem:[%s1289_s4] sm:$0xff]   ;;  %v987_v1 = vmov 0.0   ;;  %v926_v3 = vld [vmem:[%s1289_s4 + $0x8] sm:$0xff]   ;;  %vm988_vm0 = vmmov 0   ;;  %v928_v5 = vld [vmem:[%s1289_s4 + $0x10] sm:$0xff]   ;;  %s1307_s22 = sld [smem:[#allocation6_spill]] }
   0x5   :  { %834 = vmatprep.subr.bf16.mxu0 %v987_v1  ;;  %850 = vmatprep.subr.bf16.mxu1 %v987_v1  ;;  %v925_v2 = vld [vmem:[%s1288_s3] sm:$0xff]   ;;  %v927_v4 = vld [vmem:[%s1288_s3 + $0x8] sm:$0xff]   ;;  %v929_v6 = vld [vmem:[%s1288_s3 + $0x10] sm:$0xff]   ;;  %vm124_vm1 = vcmask 785408   ;;  %s1308_s26 = sld [smem:[#allocation5_spill]] }
   0x6   :  { %835 = vmatpush3.bf16.msra.mxu0 %v924_v0  ;;  %846 = vmatprep.mubr.msk.bf16.mxu0 %vm988_vm0, %v987_v1  ;;  %v930_v7 = vld [vmem:[%s1289_s4 + $0x18] sm:$0xff]   ;;  %v932_v9 = vld [vmem:[%s1289_s4 + $0x20] sm:$0xff]   ;;  %v934_v11 = vld [vmem:[%s1289_s4 + $0x28] sm:$0xff]  }
   0x7   :  { %851 = vmatpush3.bf16.msra.mxu1 %v925_v2  ;;  %836 = vmatprep.subr.bf16.mxu0 %v987_v1  ;;  %v931_v8 = vld [vmem:[%s1288_s3 + $0x18] sm:$0xff]   ;;  %v933_v10 = vld [vmem:[%s1288_s3 + $0x20] sm:$0xff]   ;;  %v935_v13 = vld [vmem:[%s1288_s3 + $0x28] sm:$0xff]  }
   0x8   :  { %852 = vmatprep.subr.bf16.mxu1 %v987_v1  ;;  %862 = vmatprep.mubr.msk.bf16.mxu1 %vm988_vm0, %v987_v1  ;;  %v936_v15 = vld [vmem:[%s1291_s6] sm:$0xff]   ;;  %v937_v18 = vld [vmem:[%s1291_s6 + $0x8] sm:$0xff]  }
   0xa   :  { %837 = vmatpush3.bf16.msra.mxu0 %v926_v3  ;;  %v62_v12 = vld [vmem:[%s1307_s22] sm:$0xff] }
   0xb   :  { %853 = vmatpush3.bf16.msra.mxu1 %v927_v4  ;;  %838 = vmatprep.subr.bf16.mxu0 %v987_v1  ;;  %v60_v14 = vld [vmem:[%s1308_s26] sm:$0xff]  ;;  %v1147_v16 = vpack.c.bf16 %v62_v12, %v62_v12 }
   0xc   :  { %854 = vmatprep.subr.bf16.mxu1 %v987_v1  ;;  %v61_v17 = vpack.c.bf16 %v60_v14, %v60_v14 }
   0xe   :  { %839 = vmatpush3.bf16.msra.mxu0 %v928_v5 }
   0xf   :  { %855 = vmatpush3.bf16.msra.mxu1 %v929_v6  ;;  %840 = vmatprep.subr.bf16.mxu0 %v987_v1 }
  0x10   :  { %856 = vmatprep.subr.bf16.mxu1 %v987_v1 }
  0x12   :  { %841 = vmatpush3.bf16.msra.mxu0 %v930_v7 }
  0x13   :  { %857 = vmatpush3.bf16.msra.mxu1 %v931_v8  ;;  %842 = vmatprep.subr.bf16.mxu0 %v987_v1 }
  0x14   :  { %858 = vmatprep.subr.bf16.mxu1 %v987_v1 }
  0x16   :  { %843 = vmatpush3.bf16.msra.mxu0 %v932_v9 }
  0x17   :  { %859 = vmatpush3.bf16.msra.mxu1 %v933_v10  ;;  %844 = vmatprep.subr.bf16.mxu0 %v987_v1 }
  0x18   :  { %860 = vmatprep.subr.bf16.mxu1 %v987_v1 }
  0x1a   :  { %845 = vmatpush3.bf16.msra.mxu0 %v934_v11 }
  0x1b   :  { %861 = vmatpush3.bf16.msra.mxu1 %v935_v13  ;;  %866 = vmatprep.subr.bf16.mxu0 %v987_v1 }
  0x1d   :  { %847 = vmatmul.mubr.msk.bf16.vlgmr.msra.gmra.mrb[0].mxu0 %vm124_vm1, %v1147_v16 }
  0x1e   :  { %863 = vmatmul.mubr.msk.bf16.vlgmr.msra.gmra.mrb[0].mxu1 %vm124_vm1, %v61_v17  ;;  %867 = vmatpush3.bf16.msra.mxu0 %v936_v15 }
  0x1f   :  { %24 = vsyncpa [#allocation3], 0  ;;  %868 = vmatprep.subr.bf16.mxu0 %v987_v1  ;;  %874 = vmatprep.mubr.msk.bf16.mxu0 %vm988_vm0, %v987_v1  ;;  %v938_v19 = vld [vmem:[%s1291_s6 + $0x10] sm:$0xff]   ;;  %v939_v20 = vld [vmem:[%s1291_s6 + $0x18] sm:$0xff]   ;;  %vm296_vm2 = vcmask 523264   ;;  %v989_v38 = vmov 0   ;;  %v348_v54 = vlaneseq }
  0x20   :  { %v940_v21 = vld [vmem:[%s1293_s8] ss:$8 sps:$4 sm:$0xff]   ;;  %v942_v22 = vld [vmem:[%s1293_s8 + $0x4] ss:$8 sps:$4 sm:$0xff]   ;;  %v945_v36 = vld [vmem:[%s1293_s8 + $0x14] ss:$8 sps:$4 sm:$0xff]   ;;  %414 = vmatprep.mubr.bf16.mxu1 %v989_v38 }
  0x21   :  { %382 = vmatprep.subr.bf16.mxu1 %v942_v22  ;;  %v766_v25 = vld [vmem:[%s1290_s5] ss:$0 sm:$0xff]  ;;  %v943_v37 = vld [vmem:[%s1293_s8 + $0x10] ss:$8 sps:$4 sm:$0xff]   ;;  %vm378_vm3 = vcmask 261120   ;;  %v947_v48 = vld [vmem:[%s1296_s11 + $0x8] sm:$0xff]  }
  0x22   :  { %869 = vmatpush3.bf16.msra.mxu0 %v937_v18  ;;  %383 = vmatpush1.bf16.msra.mxu1 %v940_v21  ;;  %v767_v39 = vld [vmem:[%s1292_s7] ss:$0 sm:$0xff]  ;;  %v948_v49 = vld [vmem:[%s1296_s11 + $0x10] sm:$0xff]   ;;  %v949_v50 = vld [vmem:[%s1296_s11 + $0x18] sm:$0xff]   ;;  %v349_v55 = vshrl.u32 %v348_v54, 7  ;;  %s1309_s26 = sld [smem:[#allocation7_spill]] }
  0x23   :  { %870 = vmatprep.subr.bf16.mxu0 %v987_v1  ;;  %384 = vmatprep.subr.bf16.mxu1 %v945_v36  ;;  %v946_v46 = vld [vmem:[%s1296_s11] sm:$0xff]   ;;  %v951_v52 = vld [vmem:[%s1296_s11 + $0x28] sm:$0xff]   ;;  %vm526_vm4 = vcmask 130048  }
  0x24   :  { %v950_v51 = vld [vmem:[%s1296_s11 + $0x20] sm:$0xff]   ;;  %v350_v56 = vsub.s32 0, %v349_v55  ;;  %v354_v58 = vsub.s32 1, %v349_v55 }
  0x25   :  { %v952_v53 = vld [vmem:[%s1295_s10] sm:$0xff]  }
  0x26   :  { %871 = vmatpush3.bf16.msra.mxu0 %v938_v19  ;;  %385 = vmatpush1.bf16.msra.mxu1 %v943_v37  ;;  %v346_v57 = vld [vmem:[%s1294_s9] sm:$0x3] }
  0x27   :  { %872 = vmatprep.subr.bf16.mxu0 %v987_v1  ;;  %878 = vmatprep.subr.bf16.mxu1 %v987_v1  ;;  %v351_v59 = vrot.slane %v346_v57, %v350_v56  ;;  %v355_v60 = vrot.slane %v346_v57, %v354_v58  ;;  %v953_v15 = vld [vmem:[%s1298_s13] sm:$0xff]  }
  0x28   :  { %v423_v6 = vld [vmem:[%s1309_s26] sm:$0xff] }
  0x29   :  { %v787_v18 = vld [vmem:[%s1297_s12] ss:$0 sm:$0xff] }
  0x2a   :  { %873 = vmatpush3.bf16.msra.mxu0 %v939_v20 }
  0x2b   :  { %900 = vmatprep.subr.bf16.mxu0 %v987_v1 }
  0xf0   :  { %v162_v23 = vpop.f32.mrb[0].mxu0 }
  0xf1   :  { %v241_v24 = vpop.f32.mrb[0].mxu1  ;;  %v848_v26 = vpop.f32.mrb[1].mxu0 }
  0xf2   :  { %v242_v27 = vadd.f32 %v241_v24, %v162_v23  ;;  %v864_v28 = vpop.f32.mrb[1].mxu1  ;;  %v165_v29 = vpop.f32.mrb[2].mxu0 }
  0xf3   :  { %v244_v30 = vpop.f32.mrb[2].mxu1  ;;  %v849_v31 = vpop.f32.mrb[3].mxu0  ;;  %v957_v28 = vld [vmem:[%s1300_s15 + $0x10] sm:$0xff]   ;;  %v958_v29 = vld [vmem:[%s1300_s15 + $0x18] sm:$0xff]  }
  0xf4   :  { %v254_v32 = vadd.f32 %v766_v25, %v242_v27  ;;  %v865_v33 = vpop.f32.mrb[3].mxu1  ;;  %v955_v25 = vld [vmem:[%s1300_s15] sm:$0xff]   ;;  %v956_v27 = vld [vmem:[%s1300_s15 + $0x8] sm:$0xff]  }
  0xf5   :  { %v788_v30 = vld [vmem:[%s1299_s14] ss:$0 sm:$0xff]  ;;  %s990_s14 = smov [#allocation2]  }
  0xf6   :  { %v255_v34 = vmax.f32 %v254_v32, 0.0  ;;  %s740_s15 = sshll.u32 %s990_s14, 4  ;;  %s741_s15 = int_to_ptr.vmem [resolvable:$true] %s740_s15 }
  0xf7   :  { %s963_s23 = scalar_lea.vmem %s741_s15, 128  ;;  %p968_p1 = scmp.lt.s32.totalorder %s741_s15, %s741_s15 }
  0xf8   :  { %v256_v35 = vpack.c.bf16 %v255_v34, %v255_v34  ;;  %p964_p0 = scmp.ne.s32.totalorder %s741_s15, %s963_s23  ;;  %p969_p2 = scmp.lt.s32.totalorder %s963_s23, %s963_s23 }
  0xfa   :  { %875 = vmatmul.mubr.msk.bf16.vlgmr.msra.gmra.mrb[4].mxu0 %vm296_vm2, %v256_v35  ;;  %p970_p3 = por %p969_p2, %p968_p1 }
  0xfb   :  { %904 = vmatprep.mubr.msk.bf16.mxu0 %vm988_vm0, %v987_v1  ;;  %901 = vmatpush3.bf16.msra.mxu0 %v953_v15 }
  0xfc   :  { %902 = vmatprep.subr.bf16.mxu0 %v987_v1  ;;  %p971_p4 = pnand %p970_p3, %p964_p0 }
 0x1cd   :  { %v334_v40 = vpop.f32.mrb[4].mxu0 }
 0x1ce   :  { %v335_v41 = vadd.f32 %v767_v39, %v334_v40  ;;  %v876_v42 = vpop.f32.mrb[5].mxu0 }
 0x1cf   :  { %v337_v43 = vpop.f32.mrb[6].mxu0 }
 0x1d0   :  { %v340_v44 = vmax.f32 %v335_v41, 0.0  ;;  %v877_v45 = vpop.f32.mrb[7].mxu0 }
 0x1d2   :  { %v341_v47 = vpack.c.bf16 %v340_v44, %v340_v44 }
 0x1d4   :  { %777 = vmatmul.mubr.msk.bf16.vlgmr.msra.gmra.mrb[4].mxu1 %vm378_vm3, %v341_v47 }
 0x1d5   :  { %879 = vmatpush3.bf16.msra.mxu1 %v946_v46  ;;  %890 = vmatprep.mubr.msk.bf16.mxu1 %vm988_vm0, %v987_v1 }
 0x1d6   :  { %880 = vmatprep.subr.bf16.mxu1 %v987_v1 }
 0x1d9   :  { %881 = vmatpush3.bf16.msra.mxu1 %v947_v48 }
 0x1da   :  { %882 = vmatprep.subr.bf16.mxu1 %v987_v1 }
 0x1dd   :  { %883 = vmatpush3.bf16.msra.mxu1 %v948_v49 }
 0x1de   :  { %884 = vmatprep.subr.bf16.mxu1 %v987_v1 }
 0x1e1   :  { %885 = vmatpush3.bf16.msra.mxu1 %v949_v50 }
 0x1e2   :  { %886 = vmatprep.subr.bf16.mxu1 %v987_v1 }
 0x1e5   :  { %887 = vmatpush3.bf16.msra.mxu1 %v950_v51 }
 0x1e6   :  { %888 = vmatprep.subr.bf16.mxu1 %v987_v1 }
 0x1e9   :  { %889 = vmatpush3.bf16.msra.mxu1 %v951_v52 }
 0x1ea   :  { %894 = vmatprep.subr.bf16.mxu1 %v987_v1 }
 0x1ec   :  { %891 = vmatmul.mubr.msk.bf16.vlgmr.msra.gmra.mrb[8].mxu1 %vm124_vm1, %v1147_v16  ;;  %v954_v16 = vld [vmem:[%s1298_s13 + $0x8] sm:$0xff]  }
 0x1ed   :  { %895 = vmatpush3.bf16.msra.mxu1 %v952_v53  ;;  %896 = vmatprep.mubr.msk.bf16.mxu1 %vm988_vm0, %v987_v1 }
 0x1ee   :  { %903 = vmatpush3.bf16.msra.mxu0 %v954_v16 }
 0x1ef   :  { %908 = vmatprep.subr.bf16.mxu0 %v987_v1 }
 0x2a7   :  { %v416_v61 = vpop.f32.mrb[4].mxu1 }
 0x2a8   :  { %v417_v62 = vadd.f32 %v416_v61, %v351_v59  ;;  %v418_v63 = vpop.f32.mrb[5].mxu1 }
 0x2a9   :  { %v419_v0 = vadd.f32 %v418_v63, %v355_v60  ;;  %v420_v2 = vpop.f32.mrb[6].mxu1 }
 0x2aa   :  { %732 = vst [vmem:[%s1303_s18] sm:$0xff] %v417_v62  ;;  %v421_v3 = vpop.f32.mrb[7].mxu1 }
 0x2ab   :  { %v424_v4 = vmul.f32 0.5, %v419_v0  ;;  %733 = vst [vmem:[%s1303_s18 + $0x8] sm:$0xff] %v419_v0 }
 0x2ad   :  { %v425_v5 = vmul.f32 1.442695, %v424_v4 }
 0x2af   :  { %959 = vpow2.f32 %v425_v5 }
 0x2b9   :  { %v960_v7 = vpop.eup %959 }
 0x2ba   :  { %v427_v8 = vmul.f32 %v960_v7, %v423_v6 }
 0x2bc   :  { %v428_v9 = vadd.f32 %v427_v8, %v417_v62 }
 0x2be   :  { %v429_v10 = vpack.c.bf16 %v428_v9, %v428_v9 }
 0x2bf   :  { %v514_v11 = vpop.f32.mrb[8].mxu1 }
 0x2c0   :  { %897 = vmatmul.mubr.msk.bf16.vlgmr.msra.gmra.mrb[12].mxu1 %vm526_vm4, %v429_v10  ;;  %v892_v12 = vpop.f32.mrb[9].mxu1 }
 0x2c1   :  { %v517_v13 = vpop.f32.mrb[10].mxu1 }
 0x2c2   :  { %v893_v14 = vpop.f32.mrb[11].mxu1 }
 0x393   :  { %v564_v17 = vpop.f32.mrb[12].mxu1 }
 0x394   :  { %v565_v19 = vadd.f32 %v564_v17, %v514_v11  ;;  %v898_v20 = vpop.f32.mrb[13].mxu1 }
 0x395   :  { %v567_v21 = vpop.f32.mrb[14].mxu1 }
 0x396   :  { %v577_v22 = vadd.f32 %v787_v18, %v565_v19  ;;  %v899_v23 = vpop.f32.mrb[15].mxu1 }
 0x398   :  { %v578_v24 = vmax.f32 %v577_v22, 0.0 }
 0x39a   :  { %v579_v26 = vpack.c.bf16 %v578_v24, %v578_v24 }
 0x39c   :  { %905 = vmatmul.mubr.msk.bf16.vlgmr.msra.gmra.mrb[8].mxu0 %vm378_vm3, %v579_v26 }
 0x39d   :  { %909 = vmatpush3.bf16.msra.mxu0 %v955_v25  ;;  %916 = vmatprep.mubr.msk.bf16.mxu0 %vm988_vm0, %v987_v1 }
 0x39e   :  { %910 = vmatprep.subr.bf16.mxu0 %v987_v1 }
 0x3a1   :  { %911 = vmatpush3.bf16.msra.mxu0 %v956_v27 }
 0x3a2   :  { %912 = vmatprep.subr.bf16.mxu0 %v987_v1 }
 0x3a5   :  { %913 = vmatpush3.bf16.msra.mxu0 %v957_v28 }
 0x3a6   :  { %914 = vmatprep.subr.bf16.mxu0 %v987_v1  ;;  %v792_v1 = vld [vmem:[%s1301_s16] ss:$0 sm:$0xff] }
 0x3a9   :  { %915 = vmatpush3.bf16.msra.mxu0 %v958_v29 }
 0x46f   :  { %v640_v31 = vpop.f32.mrb[8].mxu0 }
 0x470   :  { %v641_v32 = vadd.f32 %v788_v30, %v640_v31  ;;  %v906_v33 = vpop.f32.mrb[9].mxu0 }
 0x471   :  { %v643_v34 = vpop.f32.mrb[10].mxu0 }
 0x472   :  { %v646_v35 = vmax.f32 %v641_v32, 0.0  ;;  %v907_v36 = vpop.f32.mrb[11].mxu0 }
 0x474   :  { %v647_v37 = vpack.c.bf16 %v646_v35, %v646_v35 }
 0x476   :  { %917 = vmatmul.mubr.msk.bf16.vlgmr.msra.gmra.mrb[12].mxu0 %vm296_vm2, %v647_v37 }
 0x549   :  { %v724_v38 = vpop.f32.mrb[12].mxu0 }
 0x54a   :  { %v725_v39 = vadd.f32 %v792_v1, %v724_v38  ;;  %v918_v40 = vpop.f32.mrb[13].mxu0 }
 0x54b   :  { %v727_v41 = vpop.f32.mrb[14].mxu0 }
 0x54c   :  { %961 = vtanh.f32 %v725_v39  ;;  %v919_v42 = vpop.f32.mrb[15].mxu0 }
 0x556   :  { %v962_v43 = vpop.eup %961 }
 0x557   :  { %731 = vst.msk [vmem:[#allocation2] sm:$0xff] %vm124_vm1, %v962_v43 }
 0x558   :  { %974 = shalt.err (!%p971_p4)
}
 0x559   :  { %s975_s10 = scalar_lea.hbm %s1302_s17, 128 }
 0x55a   :  { %p976_p5 = scmp.ne.s32.totalorder %s1302_s17, %s975_s10  ;;  %p979_p6 = scmp.lt.u32.totalorder %s975_s10, %s1302_s17 }
 0x55c   :  { %p981_p7 = pnand %p979_p6, %p976_p5 }
 0x55e   :  { %984 = shalt.err (!%p981_p7)
}
 0x55f   :  { %743 = dma.vmem_to_hbm [thread:$0]  %s741_s15, 128, %s1302_s17, [#allocation3]  }
 0x560   :  { %985 = dma.done.wait [#allocation3], 128  }
 0x561   :  { %986 = vsyncadd [#allocation3], 4294967168 }
 0x562   :  { %751 = vsyncpa [#allocation3], 1 }

</bundles_post_ra>
